<compile_context>
chip_gen: v7x
topology: tpu7x:2x2x1
jax: 0.10.0
libtpu: 0.0.40
codegen_flags: <defaults>
</compile_context>

<pallas_src>
import functools

import jax
import jax.numpy as jnp
from jax.experimental import pallas as pl
from jax.experimental.pallas import tpu as pltpu


def ffn_kernel(x_ref, w1_ref, b1_ref, w2_ref, b2_ref, o_ref, acc_ref):
    k = pl.program_id(1)

    # fc1 slice: bf16 MXU matmul, f32 accumulate; bias + ReLU in f32.
    h = jnp.dot(x_ref[...], w1_ref[...], preferred_element_type=jnp.float32)
    h = jnp.maximum(h + b1_ref[...], 0.0)
    # dropout: identity in eval mode.

    # fc2 partial contribution of this hidden slice.
    partial = jnp.dot(h.astype(w2_ref.dtype), w2_ref[...],
                      preferred_element_type=jnp.float32)

    @pl.when(k == 0)
    def _():
        acc_ref[...] = partial          # first step: plain write (no zero-fill pass)

    @pl.when(k > 0)
    def _():
        acc_ref[...] += partial

    @pl.when(k == pl.num_programs(1) - 1)
    def _():
        o_ref[...] = (acc_ref[...] + b2_ref[...]).astype(o_ref.dtype)


def _round_up(x, m):
    return ((x + m - 1) // m) * m


@functools.partial(jax.jit, static_argnames=("tm", "th"))
def positionwise_feed_forward(x, w1, b1, w2, b2, *, tm=256, th=512):
    """x: (batch, seq, d_model). Returns (batch, seq, d_model) in x.dtype."""
    batch, seq, d_model = x.shape
    hidden = w1.shape[1]
    out_dtype = x.dtype

    M = batch * seq
    # Effective tiles: shrink to the (padded) problem size for small inputs.
    tm_eff = min(tm, _round_up(M, 8))          # sublane-aligned row tile
    th_eff = min(th, _round_up(hidden, 128))   # lane-aligned hidden tile
    M_pad = _round_up(M, tm_eff)
    H_pad = _round_up(hidden, th_eff)
    D_pad = _round_up(d_model, 128)

    # bf16 matmul operands; zero padding is exact.
    x2d = x.reshape(M, d_model).astype(jnp.bfloat16)
    x2d = jnp.pad(x2d, ((0, M_pad - M), (0, D_pad - d_model)))
    w1p = jnp.pad(w1.astype(jnp.bfloat16),
                  ((0, D_pad - d_model), (0, H_pad - hidden)))
    w2p = jnp.pad(w2.astype(jnp.bfloat16),
                  ((0, H_pad - hidden), (0, D_pad - d_model)))
    b1p = jnp.pad(b1.reshape(1, hidden).astype(jnp.float32),
                  ((0, 0), (0, H_pad - hidden)))
    b2p = jnp.pad(b2.reshape(1, d_model).astype(jnp.float32),
                  ((0, 0), (0, D_pad - d_model)))

    grid = (M_pad // tm_eff, H_pad // th_eff)   # reduction (hidden) axis last

    out2d = pl.pallas_call(
        ffn_kernel,
        out_shape=jax.ShapeDtypeStruct((M_pad, D_pad), out_dtype),
        grid_spec=pltpu.PrefetchScalarGridSpec(
            num_scalar_prefetch=0,
            grid=grid,
            in_specs=[
                pl.BlockSpec((tm_eff, D_pad), lambda i, k: (i, 0)),   # x tile
                pl.BlockSpec((D_pad, th_eff), lambda i, k: (0, k)),   # w1 slice (streamed)
                pl.BlockSpec((1, th_eff), lambda i, k: (0, k)),       # b1 slice
                pl.BlockSpec((th_eff, D_pad), lambda i, k: (k, 0)),   # w2 slice (streamed)
                pl.BlockSpec((1, D_pad), lambda i, k: (0, 0)),        # b2
            ],
            out_specs=pl.BlockSpec((tm_eff, D_pad), lambda i, k: (i, 0)),
            scratch_shapes=[pltpu.VMEM((tm_eff, D_pad), jnp.float32)],  # f32 accumulator
        ),
        compiler_params=pltpu.CompilerParams(
            dimension_semantics=("parallel", "arbitrary"),
            # Default tiles (tm=256, th=512) stay well under this even at
            # d_model=4096; leaves headroom on v7x's 64 MiB VMEM.
            vmem_limit_bytes=48 * 1024 * 1024,
        ),
    )(x2d, w1p, b1p, w2p, b2p)

    return out2d[:M, :d_model].reshape(batch, seq, d_model)


def init_params(key, d_model, hidden):
    """Deterministic init mirroring nn.Linear's U(-1/sqrt(fan_in), 1/sqrt(fan_in))."""
    k1, k2, k3, k4 = jax.random.split(key, 4)
    bound1 = 1.0 / jnp.sqrt(d_model)
    bound2 = 1.0 / jnp.sqrt(hidden)
    # Stored as (in_features, out_features), i.e. transposed vs. torch's (out, in).
    w1 = jax.random.uniform(k1, (d_model, hidden), jnp.float32, -bound1, bound1)
    b1 = jax.random.uniform(k2, (hidden,), jnp.float32, -bound1, bound1)
    w2 = jax.random.uniform(k3, (hidden, d_model), jnp.float32, -bound2, bound2)
    b2 = jax.random.uniform(k4, (d_model,), jnp.float32, -bound2, bound2)
    return w1, b1, w2, b2


def reference_ffn(x, w1, b1, w2, b2):
    """Same math with the same bf16-matmul / f32-accumulate precision policy."""
    h = jnp.dot(x.astype(jnp.bfloat16), w1.astype(jnp.bfloat16),
                preferred_element_type=jnp.float32) + b1
    h = jnp.maximum(h, 0.0)
    out = jnp.dot(h.astype(jnp.bfloat16), w2.astype(jnp.bfloat16),
                  preferred_element_type=jnp.float32) + b2
    return out


if __name__ == "__main__":
    # Small shapes consistent with the module's forward (batch, seq, d_model).
    batch, seq, d_model, hidden = 2, 8, 128, 256

    key = jax.random.PRNGKey(0)
    kx, kp = jax.random.split(key)
    x = jax.random.normal(kx, (batch, seq, d_model), jnp.float32)
    w1, b1, w2, b2 = init_params(kp, d_model, hidden)

    out = positionwise_feed_forward(x, w1, b1, w2, b2)
    out = jax.block_until_ready(out)

    ref = reference_ffn(x, w1, b1, w2, b2)
    assert out.shape == (batch, seq, d_model)
    assert jnp.allclose(out, ref, atol=1e-2, rtol=1e-2), "mismatch vs reference"

    print("KERNEL_OK")
</pallas_src>

<mosaic_0001>
module attributes {stable_mosaic.version = 11 : i64} {
  func.func @ffn_kernel(%arg0: i32, %arg1: i32, %arg2: memref<16x128xbf16, #tpu.memory_space<vmem>>, %arg3: memref<128x256xbf16, #tpu.memory_space<vmem>>, %arg4: memref<1x256xf32, #tpu.memory_space<vmem>>, %arg5: memref<256x128xbf16, #tpu.memory_space<vmem>>, %arg6: memref<1x128xf32, #tpu.memory_space<vmem>>, %arg7: memref<16x128xf32, #tpu.memory_space<vmem>>, %arg8: memref<16x128xf32, #tpu.memory_space<vmem>>) attributes {dimension_semantics = [#tpu.dimension_semantics<parallel>, #tpu.dimension_semantics<arbitrary>], iteration_bounds = array<i64: 1, 1>, scalar_prefetch = 0 : i64, scratch_operands = 1 : i64, tpu.core_type = #tpu.core_type<tc>, window_params = [{transform_indices = @transform_0, window_bounds = array<i64: 16, 128>}, {transform_indices = @transform_1, window_bounds = array<i64: 128, 256>}, {transform_indices = @transform_2, window_bounds = array<i64: 1, 256>}, {transform_indices = @transform_3, window_bounds = array<i64: 256, 128>}, {pipeline_mode = #tpu.pipeline_mode<synchronous>, transform_indices = @transform_4, window_bounds = array<i64: 1, 128>}, {transform_indices = @transform_5, window_bounds = array<i64: 16, 128>}]} {
    %c0 = arith.constant 0 : index
    %c0_0 = arith.constant 0 : index
    %0 = vector.load %arg2[%c0, %c0_0] : memref<16x128xbf16, #tpu.memory_space<vmem>>, vector<16x128xbf16>
    %c0_1 = arith.constant 0 : index
    %c0_2 = arith.constant 0 : index
    %1 = vector.load %arg3[%c0_1, %c0_2] : memref<128x256xbf16, #tpu.memory_space<vmem>>, vector<128x256xbf16>
    %cst = arith.constant dense<0.000000e+00> : vector<16x256xf32>
    %2 = tpu.matmul %0, %1, %cst {dimension_numbers = #tpu.dot_dimension_numbers<[1], [0], [0], [1], [0, 0, 1, 1], [], []>} : vector<16x128xbf16>, vector<128x256xbf16>, vector<16x256xf32> -> vector<16x256xf32>
    %c0_3 = arith.constant 0 : index
    %c0_4 = arith.constant 0 : index
    %3 = vector.load %arg4[%c0_3, %c0_4] : memref<1x256xf32, #tpu.memory_space<vmem>>, vector<1x256xf32>
    %4 = vector.broadcast %3 : vector<1x256xf32> to vector<16x256xf32>
    %5 = arith.addf %2, %4 : vector<16x256xf32>
    %cst_5 = arith.constant 0.000000e+00 : f32
    %6 = vector.broadcast %cst_5 : f32 to vector<16x256xf32>
    %7 = arith.maximumf %5, %6 : vector<16x256xf32>
    %8 = arith.truncf %7 : vector<16x256xf32> to vector<16x256xbf16>
    %c0_6 = arith.constant 0 : index
    %c0_7 = arith.constant 0 : index
    %9 = vector.load %arg5[%c0_6, %c0_7] : memref<256x128xbf16, #tpu.memory_space<vmem>>, vector<256x128xbf16>
    %cst_8 = arith.constant dense<0.000000e+00> : vector<16x128xf32>
    %10 = tpu.matmul %8, %9, %cst_8 {dimension_numbers = #tpu.dot_dimension_numbers<[1], [0], [0], [1], [0, 0, 1, 1], [], []>} : vector<16x256xbf16>, vector<256x128xbf16>, vector<16x128xf32> -> vector<16x128xf32>
    %c0_i32 = arith.constant 0 : i32
    %11 = arith.cmpi eq, %arg1, %c0_i32 : i32
    %12 = arith.extui %11 : i1 to i32
    %c0_i32_9 = arith.constant 0 : i32
    %13 = arith.cmpi ne, %12, %c0_i32_9 : i32
    scf.if %13 {
      %c0_14 = arith.constant 0 : index
      %c0_15 = arith.constant 0 : index
      %20 = vector.load %arg8[%c0_14, %c0_15] : memref<16x128xf32, #tpu.memory_space<vmem>>, vector<16x128xf32>
      tpu.vector_store %arg8[%c0_14, %c0_15], %10 {strides = array<i32>} : memref<16x128xf32, #tpu.memory_space<vmem>>, vector<16x128xf32>,
    } else {
    }
    %c0_i32_10 = arith.constant 0 : i32
    %14 = arith.cmpi sgt, %arg1, %c0_i32_10 : i32
    %15 = arith.extui %14 : i1 to i32
    %c0_i32_11 = arith.constant 0 : i32
    %16 = arith.cmpi ne, %15, %c0_i32_11 : i32
    scf.if %16 {
      %c0_14 = arith.constant 0 : index
      %c0_15 = arith.constant 0 : index
      %20 = vector.load %arg8[%c0_14, %c0_15] : memref<16x128xf32, #tpu.memory_space<vmem>>, vector<16x128xf32>
      %21 = arith.addf %20, %10 : vector<16x128xf32>
      %c0_16 = arith.constant 0 : index
      %c0_17 = arith.constant 0 : index
      %22 = vector.load %arg8[%c0_16, %c0_17] : memref<16x128xf32, #tpu.memory_space<vmem>>, vector<16x128xf32>
      tpu.vector_store %arg8[%c0_16, %c0_17], %21 {strides = array<i32>} : memref<16x128xf32, #tpu.memory_space<vmem>>, vector<16x128xf32>,
    } else {
    }
    %c0_i32_12 = arith.constant 0 : i32
    %17 = arith.cmpi eq, %arg1, %c0_i32_12 : i32
    %18 = arith.extui %17 : i1 to i32
    %c0_i32_13 = arith.constant 0 : i32
    %19 = arith.cmpi ne, %18, %c0_i32_13 : i32
    scf.if %19 {
      %c0_14 = arith.constant 0 : index
      %c0_15 = arith.constant 0 : index
      %20 = vector.load %arg8[%c0_14, %c0_15] : memref<16x128xf32, #tpu.memory_space<vmem>>, vector<16x128xf32>
      %c0_16 = arith.constant 0 : index
      %c0_17 = arith.constant 0 : index
      %21 = vector.load %arg6[%c0_16, %c0_17] : memref<1x128xf32, #tpu.memory_space<vmem>>, vector<1x128xf32>
      %22 = vector.broadcast %21 : vector<1x128xf32> to vector<16x128xf32>
      %23 = arith.addf %20, %22 : vector<16x128xf32>
      %c0_18 = arith.constant 0 : index
      %c0_19 = arith.constant 0 : index
      %24 = vector.load %arg7[%c0_18, %c0_19] : memref<16x128xf32, #tpu.memory_space<vmem>>, vector<16x128xf32>
      tpu.vector_store %arg7[%c0_18, %c0_19], %23 {strides = array<i32>} : memref<16x128xf32, #tpu.memory_space<vmem>>, vector<16x128xf32>,
    } else {
    }
    return
  }
  func.func @transform_0(%arg0: i32, %arg1: i32) -> (i32, i32) {
    %c0_i32 = arith.constant 0 : i32
    %c0_i32_0 = arith.constant 0 : i32
    return %arg0, %c0_i32 : i32, i32
  }
  func.func @transform_1(%arg0: i32, %arg1: i32) -> (i32, i32) {
    %c0_i32 = arith.constant 0 : i32
    %c0_i32_0 = arith.constant 0 : i32
    return %c0_i32, %arg1 : i32, i32
  }
  func.func @transform_2(%arg0: i32, %arg1: i32) -> (i32, i32) {
    %c0_i32 = arith.constant 0 : i32
    %c0_i32_0 = arith.constant 0 : i32
    return %c0_i32, %arg1 : i32, i32
  }
  func.func @transform_3(%arg0: i32, %arg1: i32) -> (i32, i32) {
    %c0_i32 = arith.constant 0 : i32
    %c0_i32_0 = arith.constant 0 : i32
    return %arg1, %c0_i32 : i32, i32
  }
  func.func @transform_4(%arg0: i32, %arg1: i32) -> (i32, i32) {
    %c0_i32 = arith.constant 0 : i32
    %c0_i32_0 = arith.constant 0 : i32
    %c0_i32_1 = arith.constant 0 : i32
    return %c0_i32, %c0_i32_0 : i32, i32
  }
  func.func @transform_5(%arg0: i32, %arg1: i32) -> (i32, i32) {
    %c0_i32 = arith.constant 0 : i32
    %c0_i32_0 = arith.constant 0 : i32
    return %arg0, %c0_i32 : i32, i32
  }
}

</mosaic_0001>

<bundles_post_ra>
// kernel: positionwise_feed_forward.1
= control target key start
LH: loop header
LB: loop body
LE: loop exit
PB: predicated region body
PF: predicated region fallthrough
CT: control target
= control target key end

     0   :  { %v529_v2 = vmov 0   ;;  %s680_s0 = inlined_call_operand.vmem [shape: bf16[16,128], index: 0, kind: input, shape index: {}]   ;;  %s681_s1 = inlined_call_operand.vmem [shape: bf16[128,256], index: 1, kind: input, shape index: {}]   ;;  %s682_s2 = inlined_call_operand.vmem [shape: f32[1,256], index: 2, kind: input, shape index: {}]   ;;  %s683_s3 = inlined_call_operand.vmem [shape: bf16[256,128], index: 3, kind: input, shape index: {}]   ;;  %s684_s4 = inlined_call_operand.vmem [shape: f32[1,128], index: 4, kind: input, shape index: {}]   ;;  %s685_s5 = inlined_call_operand.hbm [shape: f32[16,128], index: 5, kind: output, shape index: {}]  }
   0x1   :  { %v464_v0 = vld [vmem:[%s681_s1 + $0x4] ss:$8 sps:$4 sm:$0xff]   ;;  %v466_v1 = vld [vmem:[%s681_s1] ss:$8 sps:$4 sm:$0xff]   ;;  %170 = vmatprep.mubr.bf16.mxu0 %v529_v2  ;;  %v467_v3 = vld [vmem:[%s681_s1 + $0x14] ss:$8 sps:$4 sm:$0xff]  }
   0x2   :  { %138 = vmatprep.subr.bf16.mxu0 %v464_v0  ;;  %v469_v4 = vld [vmem:[%s681_s1 + $0x10] ss:$8 sps:$4 sm:$0xff]   ;;  %v470_v5 = vld [vmem:[%s681_s1 + $0x24] ss:$8 sps:$4 sm:$0xff]   ;;  %v472_v6 = vld [vmem:[%s681_s1 + $0x20] ss:$8 sps:$4 sm:$0xff]  }
   0x3   :  { %139 = vmatpush1.bf16.msra.mxu0 %v466_v1  ;;  %v473_v7 = vld [vmem:[%s681_s1 + $0x34] ss:$8 sps:$4 sm:$0xff]   ;;  %v475_v8 = vld [vmem:[%s681_s1 + $0x30] ss:$8 sps:$4 sm:$0xff]   ;;  %v476_v9 = vld [vmem:[%s681_s1 + $0x44] ss:$8 sps:$4 sm:$0xff]  }
   0x4   :  { %140 = vmatprep.subr.bf16.mxu0 %v467_v3  ;;  %v489_v10 = vld [vmem:[%s683_s3 + $0x40] sm:$0xff]   ;;  %v479_v13 = vld [vmem:[%s681_s1 + $0x54] ss:$8 sps:$4 sm:$0xff]   ;;  %v491_v14 = vld [vmem:[%s683_s3 + $0x48] sm:$0xff]  }
   0x5   :  { %v478_v11 = vld [vmem:[%s681_s1 + $0x40] ss:$8 sps:$4 sm:$0xff]   ;;  %438 = vmatprep.subr.bf16.mxu1 %v489_v10  ;;  %v493_v16 = vld [vmem:[%s683_s3 + $0x50] sm:$0xff]   ;;  %v482_v18 = vld [vmem:[%s681_s1 + $0x64] ss:$8 sps:$4 sm:$0xff]  }
   0x6   :  { %v490_v12 = vld [vmem:[%s683_s3] sm:$0xff]   ;;  %v492_v15 = vld [vmem:[%s683_s3 + $0x8] sm:$0xff]   ;;  %v481_v17 = vld [vmem:[%s681_s1 + $0x50] ss:$8 sps:$4 sm:$0xff]  }
   0x7   :  { %141 = vmatpush1.bf16.msra.mxu0 %v469_v4  ;;  %439 = vmatpush3.bf16.msra.mxu1 %v490_v12  ;;  %v494_v19 = vld [vmem:[%s683_s3 + $0x10] sm:$0xff]   ;;  %v495_v20 = vld [vmem:[%s683_s3 + $0x58] sm:$0xff]   ;;  %v484_v21 = vld [vmem:[%s681_s1 + $0x60] ss:$8 sps:$4 sm:$0xff]  }
   0x8   :  { %142 = vmatprep.subr.bf16.mxu0 %v470_v5  ;;  %440 = vmatprep.subr.bf16.mxu1 %v491_v14  ;;  %v485_v22 = vld [vmem:[%s681_s1 + $0x74] ss:$8 sps:$4 sm:$0xff]   ;;  %v497_v24 = vld [vmem:[%s683_s3 + $0x60] sm:$0xff]  }
   0x9   :  { %v496_v23 = vld [vmem:[%s683_s3 + $0x18] sm:$0xff]  }
   0xb   :  { %143 = vmatpush1.bf16.msra.mxu0 %v472_v6  ;;  %441 = vmatpush3.bf16.msra.mxu1 %v492_v15 }
   0xc   :  { %144 = vmatprep.subr.bf16.mxu0 %v473_v7  ;;  %442 = vmatprep.subr.bf16.mxu1 %v493_v16 }
   0xf   :  { %145 = vmatpush1.bf16.msra.mxu0 %v475_v8  ;;  %443 = vmatpush3.bf16.msra.mxu1 %v494_v19 }
  0x10   :  { %146 = vmatprep.subr.bf16.mxu0 %v476_v9  ;;  %444 = vmatprep.subr.bf16.mxu1 %v495_v20 }
  0x13   :  { %147 = vmatpush1.bf16.msra.mxu0 %v478_v11 }
  0x14   :  { %148 = vmatprep.subr.bf16.mxu0 %v479_v13 }
  0x17   :  { %149 = vmatpush1.bf16.msra.mxu0 %v481_v17 }
  0x18   :  { %150 = vmatprep.subr.bf16.mxu0 %v482_v18 }
  0x19   :  { %10 = vsyncpa [#allocation4], 0  ;;  %v487_v25 = vld [vmem:[%s681_s1 + $0x70] ss:$8 sps:$4 sm:$0xff]   ;;  %445 = vmatpush3.bf16.msra.mxu1 %v496_v23  ;;  %v498_v26 = vld [vmem:[%s683_s3 + $0x20] sm:$0xff]   ;;  %v42_v34 = vlaneseq  ;;  %s530_s9 = smov [#allocation3]  }
  0x1a   :  { %446 = vmatprep.subr.bf16.mxu1 %v497_v24  ;;  %v499_v27 = vld [vmem:[%s683_s3 + $0x68] sm:$0xff]   ;;  %v488_v28 = vld [vmem:[%s680_s0] sm:$0xff]   ;;  %v501_v30 = vld [vmem:[%s683_s3 + $0x70] sm:$0xff]   ;;  %s393_s10 = sshll.u32 %s530_s9, 4  ;;  %s394_s10 = int_to_ptr.vmem [resolvable:$true] %s393_s10 }
  0x1b   :  { %151 = vmatpush1.bf16.msra.mxu0 %v484_v21  ;;  %v500_v29 = vld [vmem:[%s683_s3 + $0x28] sm:$0xff]   ;;  %v502_v31 = vld [vmem:[%s683_s3 + $0x30] sm:$0xff]   ;;  %v503_v32 = vld [vmem:[%s683_s3 + $0x78] sm:$0xff]   ;;  %v43_v35 = vshrl.u32 %v42_v34, 7  ;;  %s505_s11 = scalar_lea.vmem %s394_s10, 256  ;;  %p510_p1 = scmp.lt.s32.totalorder %s394_s10, %s394_s10 }
  0x1c   :  { %152 = vmatprep.subr.bf16.mxu0 %v485_v22  ;;  %v504_v33 = vld [vmem:[%s683_s3 + $0x38] sm:$0xff]   ;;  %v40_v37 = vld [vmem:[%s682_s2] sm:$0x3]  ;;  %p506_p0 = scmp.ne.s32.totalorder %s394_s10, %s505_s11  ;;  %p511_p2 = scmp.lt.s32.totalorder %s505_s11, %s505_s11 }
  0x1d   :  { %447 = vmatpush3.bf16.msra.mxu1 %v498_v26  ;;  %v44_v36 = vsub.s32 0, %v43_v35  ;;  %v48_v38 = vsub.s32 1, %v43_v35  ;;  %v437_v57 = vld [vmem:[%s684_s4] ss:$0 sm:$0xff] }
  0x1e   :  { %448 = vmatprep.subr.bf16.mxu1 %v499_v27  ;;  %p512_p3 = por %p511_p2, %p510_p1 }
  0x1f   :  { %153 = vmatpush1.bf16.msra.mxu0 %v487_v25  ;;  %v45_v39 = vrot.slane %v40_v37, %v44_v36  ;;  %v49_v40 = vrot.slane %v40_v37, %v48_v38 }
  0x20   :  { %p513_p4 = pnand %p512_p3, %p506_p0 }
  0x21   :  { %449 = vmatpush3.bf16.msra.mxu1 %v500_v29 }
  0x22   :  { %171 = vmatmul.mubr.bf16.vlgmr.msra.gmra.mrb[0].mxu0 %v488_v28  ;;  %450 = vmatprep.subr.bf16.mxu1 %v501_v30 }
  0x25   :  { %451 = vmatpush3.bf16.msra.mxu1 %v502_v31 }
  0x26   :  { %452 = vmatprep.subr.bf16.mxu1 %v503_v32 }
  0x29   :  { %453 = vmatpush3.bf16.msra.mxu1 %v504_v33 }
  0xf5   :  { %v172_v41 = vpop.f32.mrb[0].mxu0 }
  0xf6   :  { %v173_v42 = vadd.f32 %v172_v41, %v45_v39  ;;  %v174_v43 = vpop.f32.mrb[1].mxu0 }
  0xf7   :  { %v175_v44 = vadd.f32 %v174_v43, %v49_v40  ;;  %v176_v45 = vpop.f32.mrb[2].mxu0 }
  0xf8   :  { %v177_v46 = vadd.f32 %v176_v45, %v45_v39  ;;  %v178_v47 = vpop.f32.mrb[3].mxu0  ;;  %v181_v49 = vmax.f32 %v173_v42, 0.0 }
  0xf9   :  { %v179_v48 = vadd.f32 %v178_v47, %v49_v40  ;;  %v182_v51 = vmax.f32 %v175_v44, 0.0 }
  0xfa   :  { %v183_v50 = vmax.f32 %v177_v46, 0.0 }
  0xfb   :  { %v184_v52 = vmax.f32 %v179_v48, 0.0 }
  0xfc   :  { %v185_v53 = vpack.c.bf16 %v183_v50, %v181_v49 }
  0xfd   :  { %v186_v54 = vpack.c.bf16 %v184_v52, %v182_v51 }
  0xff   :  { %347 = vmatprep.mubr.bf16.mxu1 %v186_v54 }
 0x100   :  { %348 = vmatmul.mubr.bf16.vlgmr.msra.gmra.mrb[0].mxu1 %v185_v53 }
 0x1d3   :  { %v454_v55 = vpop.f32.mrb[0].mxu1 }
 0x1d4   :  { %v455_v56 = vpop.f32.mrb[1].mxu1 }
 0x1d5   :  { %v456_v58 = vadd.f32 %v455_v56, %v454_v55  ;;  %v457_v59 = vpop.f32.mrb[2].mxu1 }
 0x1d6   :  { %v458_v60 = vpop.f32.mrb[3].mxu1 }
 0x1d7   :  { %v384_v61 = vadd.f32 %v456_v58, %v437_v57  ;;  %v459_v62 = vadd.f32 %v458_v60, %v457_v59 }
 0x1d9   :  { %386 = vst [vmem:[#allocation3] sm:$0xff] %v384_v61  ;;  %v385_v63 = vadd.f32 %v459_v62, %v437_v57 }
 0x1db   :  { %387 = vst [vmem:[#allocation3 + $0x8] sm:$0xff] %v385_v63 }
 0x1dc   :  { %516 = shalt.err (!%p513_p4)
}
 0x1dd   :  { %s517_s13 = scalar_lea.hbm %s685_s5, 256 }
 0x1de   :  { %p518_p5 = scmp.ne.s32.totalorder %s685_s5, %s517_s13  ;;  %p521_p6 = scmp.lt.u32.totalorder %s517_s13, %s685_s5 }
 0x1e0   :  { %p523_p7 = pnand %p521_p6, %p518_p5 }
 0x1e2   :  { %526 = shalt.err (!%p523_p7)
}
 0x1e3   :  { %s531_s18 = smov 128   ;;  %s532_s19 = smov 8  }
 0x1e4   :  { %399 = dma.vmem_to_hbm [thread:$0]  %s394_s10, 256, %s685_s5, [#allocation4], %s531_s18, %s531_s18, %s532_s19  }
 0x1e5   :  { %527 = dma.done.wait [#allocation4], 256  }
 0x1e6   :  { %528 = vsyncadd [#allocation4], 4294967040 }
 0x1e7   :  { %403 = vsyncpa [#allocation4], 1 }

</bundles_post_ra>
